<compile_context>
chip_gen: v5e
topology: v5e:2x2
jax: 0.10.0
libtpu: 0.0.40
codegen_flags: <defaults>
</compile_context>

<pallas_src>
import math
import jax
import jax.numpy as jnp
from jax.experimental import pallas as pl
from jax.experimental.pallas import tpu as pltpu

EMBED = 32
HEADS = 4
HEAD_SIZE = EMBED // HEADS
FFN = 4 * EMBED
SEQ = 8           # ctx_length
BATCH = 2
LN_EPS = 1e-5     # torch nn.LayerNorm default


def _layer_norm(x, gamma, beta):
    mean = jnp.mean(x, axis=-1, keepdims=True)
    var = jnp.mean((x - mean) ** 2, axis=-1, keepdims=True)   # biased, like torch LN
    return (x - mean) * jax.lax.rsqrt(var + LN_EPS) * gamma + beta


def _gelu_exact(x):
    # torch nn.GELU() default = exact erf formulation
    return 0.5 * x * (1.0 + jax.lax.erf(x * (1.0 / math.sqrt(2.0))))


def encoder_layer_kernel(x_ref, wqkv_ref, wproj_ref, w1_ref, w2_ref, vecs_ref, o_ref):
    B, T, E = x_ref.shape
    H, hd = HEADS, HEAD_SIZE
    N = B * T

    x = x_ref[...].reshape(N, E)          # merge (B,T) -> rows (lane dim unchanged)

    # packed vectors: rows 0..5 hold E-wide vectors (zero-padded to 4E lanes), row 6 = bf1
    g1 = vecs_ref[0:1, :E]
    b1 = vecs_ref[1:2, :E]
    bproj = vecs_ref[2:3, :E]
    g2 = vecs_ref[3:4, :E]
    b2 = vecs_ref[4:5, :E]
    bf2 = vecs_ref[5:6, :E]
    bf1 = vecs_ref[6:7, :]                # (1, 4E)

    # ---- multi-head self-attention on LN1(x)  (encoder: no causal mask) ----
    xn = _layer_norm(x, g1, b1)
    # one fused QKV matmul; 1/sqrt(E) already folded into the Q columns of Wqkv
    qkv = jnp.dot(xn, wqkv_ref[...], preferred_element_type=jnp.float32)   # (N, 3E)

    def heads_to_batch(z2d):
        # (N, E) -> (H*B, T, hd), batch index = h*B + b   (static slices + leading concat)
        return jnp.concatenate(
            [z2d[:, h * hd:(h + 1) * hd].reshape(B, T, hd) for h in range(H)], axis=0)

    q = heads_to_batch(qkv[:, 0:E])
    k = heads_to_batch(qkv[:, E:2 * E])
    v = heads_to_batch(qkv[:, 2 * E:3 * E])

    # two contractions batched over B*H (instead of 2*H tiny per-head dots)
    s = jnp.einsum('nqd,nkd->nqk', q, k, preferred_element_type=jnp.float32)
    s = s - jnp.max(s, axis=-1, keepdims=True)
    p = jnp.exp(s)
    # softmax denominator via EUP reciprocal (approx) instead of a VALU divide
    p = p * pl.reciprocal(jnp.sum(p, axis=-1, keepdims=True), approx=True)
    # attn_dropout: identity in eval mode
    ctx = jnp.einsum('nqk,nkd->nqd', p, v, preferred_element_type=jnp.float32)

    # merge heads back: columns ordered [h0 | h1 | h2 | h3] to match Wproj layout
    attn = jnp.concatenate([ctx[h * B:(h + 1) * B] for h in range(H)], axis=-1)  # (B,T,E)
    attn = attn.reshape(N, E)
    attn = jnp.dot(attn, wproj_ref[...], preferred_element_type=jnp.float32) + bproj
    # resid_dropout: identity in eval mode
    x1 = x + attn                                                     # residual 1

    # ---- feed-forward on LN2(x1) ----
    xn2 = _layer_norm(x1, g2, b2)
    hdn = jnp.dot(xn2, w1_ref[...], preferred_element_type=jnp.float32) + bf1   # (N, 4E)
    hdn = _gelu_exact(hdn)
    ffn = jnp.dot(hdn, w2_ref[...], preferred_element_type=jnp.float32) + bf2
    # ffn dropout: identity in eval mode
    y = x1 + ffn                                                      # residual 2

    # ---- lane-dense store ----
    if o_ref.shape[-1] == E:
        o_ref[...] = y.reshape(o_ref.shape).astype(o_ref.dtype)
    else:
        rows_per = o_ref.shape[-1] // E            # pack `rows_per` rows into 128 lanes
        y3 = y.reshape(N // rows_per, rows_per, E)
        o_ref[...] = jnp.concatenate(
            [y3[:, j, :] for j in range(rows_per)], axis=-1).astype(o_ref.dtype)


def encoder_layer(x, packed_params):
    wqkv, wproj, w1, w2, vecs = packed_params
    B, T, E = x.shape
    N = B * T

    # lane-dense output slab if the flat size tiles into 128-lane rows
    lane_pack = (E < 128) and (128 % E == 0) and (N % (128 // E) == 0)
    out_shape2d = (N * E // 128, 128) if lane_pack else (N, E)

    out = pl.pallas_call(
        encoder_layer_kernel,
        out_shape=jax.ShapeDtypeStruct(out_shape2d, x.dtype),
        grid=(1,),                          # single step: per-step overhead dwarfs compute
        in_specs=[
            pl.BlockSpec((B, T, E), lambda i: (0, 0, 0)),
            pl.BlockSpec(wqkv.shape, lambda i: (0, 0)),
            pl.BlockSpec(wproj.shape, lambda i: (0, 0)),
            pl.BlockSpec(w1.shape, lambda i: (0, 0)),
            pl.BlockSpec(w2.shape, lambda i: (0, 0)),
            pl.BlockSpec(vecs.shape, lambda i: (0, 0)),
        ],
        out_specs=pl.BlockSpec(out_shape2d, lambda i: (0, 0)),
        compiler_params=pltpu.CompilerParams(
            dimension_semantics=("arbitrary",)),   # no megacore split at this size
    )(x, wqkv, wproj, w1, w2, vecs)
    return out.reshape(B, T, E)


def init_params(key):
    ks = jax.random.split(key, 7)

    def nrm(k, shape, scale=0.02):
        return (scale * jax.random.normal(k, shape)).astype(jnp.float32)

    E, F = EMBED, FFN
    # wqkv columns: [Q_h0 | ... | Q_h3 | K_h0 | ... | V_h0 | ...], each block (E, hd);
    # equivalent to the per-head torch Linear weights pre-transposed and fused.
    return dict(
        g1=jnp.ones((E,), jnp.float32),
        b1=jnp.zeros((E,), jnp.float32),
        wqkv=nrm(ks[0], (E, 3 * E)),
        wproj=nrm(ks[1], (E, E)),
        bproj=nrm(ks[2], (E,)),
        g2=jnp.ones((E,), jnp.float32),
        b2=jnp.zeros((E,), jnp.float32),
        w1=nrm(ks[3], (E, F)),
        bf1=nrm(ks[4], (F,)),
        w2=nrm(ks[5], (F, E)),
        bf2=nrm(ks[6], (E,)),
    )


def pack_params(p):
    E, F = EMBED, FFN
    # fold the attention scale (1/sqrt(embed_size), as in the torch reference) into Q
    wqkv = p['wqkv'].at[:, :E].multiply(jnp.float32(1.0 / math.sqrt(E)))

    def pad_row(v):
        return jnp.pad(v, (0, F - v.shape[0]))

    vecs = jnp.stack([pad_row(p['g1']), pad_row(p['b1']), pad_row(p['bproj']),
                      pad_row(p['g2']), pad_row(p['b2']), pad_row(p['bf2']),
                      p['bf1']], axis=0)                               # (7, 4E)
    return wqkv, p['wproj'], p['w1'], p['w2'], vecs


def encoder_layer_ref(x, p):
    """Pure-JAX reference mirroring the torch EncoderLayer forward."""
    def ln(z, g, b):
        m = z.mean(-1, keepdims=True)
        v = ((z - m) ** 2).mean(-1, keepdims=True)
        return (z - m) / jnp.sqrt(v + LN_EPS) * g + b

    E, hd = EMBED, HEAD_SIZE
    xn = ln(x, p['g1'], p['b1'])
    qkv = xn @ p['wqkv']
    heads = []
    for h in range(HEADS):
        q = qkv[..., h * hd:(h + 1) * hd]
        k = qkv[..., E + h * hd:E + (h + 1) * hd]
        v = qkv[..., 2 * E + h * hd:2 * E + (h + 1) * hd]
        w = jnp.einsum('btd,bsd->bts', q, k) / math.sqrt(E)   # torch: / ebd_dim**0.5
        w = jax.nn.softmax(w, axis=-1)
        heads.append(jnp.einsum('bts,bsd->btd', w, v))
    attn = jnp.concatenate(heads, -1) @ p['wproj'] + p['bproj']
    x1 = x + attn
    xn2 = ln(x1, p['g2'], p['b2'])
    h1 = jax.nn.gelu(xn2 @ p['w1'] + p['bf1'], approximate=False)
    return x1 + h1 @ p['w2'] + p['bf2']


# TODO(synk): nn.Dropout layers are treated as identity (inference); stochastic
# dropout would use pltpu.prng_seed / prng_random_bits if training-mode is needed.

if __name__ == "__main__":
    key = jax.random.PRNGKey(0)
    kx, kp = jax.random.split(key)
    x = jax.random.normal(kx, (BATCH, SEQ, EMBED), dtype=jnp.float32)
    params = init_params(kp)
    packed = pack_params(params)

    out = encoder_layer(x, packed)
    out = jax.block_until_ready(out)

    assert out.shape == (BATCH, SEQ, EMBED)
    assert bool(jnp.all(jnp.isfinite(out)))

    ref = encoder_layer_ref(x, params)
    max_err = float(jnp.max(jnp.abs(out - ref)))
    assert max_err < 1e-3, f"kernel/reference mismatch: {max_err}"
    print("KERNEL_OK")
</pallas_src>

<mosaic_0001>
module attributes {stable_mosaic.version = 11 : i64} {
  func.func @encoder_layer_kernel(%arg0: i32, %arg1: memref<2x8x32xf32, #tpu.memory_space<vmem>>, %arg2: memref<32x96xf32, #tpu.memory_space<vmem>>, %arg3: memref<32x32xf32, #tpu.memory_space<vmem>>, %arg4: memref<32x128xf32, #tpu.memory_space<vmem>>, %arg5: memref<128x32xf32, #tpu.memory_space<vmem>>, %arg6: memref<7x128xf32, #tpu.memory_space<vmem>>, %arg7: memref<4x128xf32, #tpu.memory_space<vmem>>) attributes {dimension_semantics = [#tpu.dimension_semantics<arbitrary>], iteration_bounds = array<i64: 1>, scalar_prefetch = 0 : i64, scratch_operands = 0 : i64, tpu.core_type = #tpu.core_type<tc>, window_params = [{pipeline_mode = #tpu.pipeline_mode<synchronous>, transform_indices = @transform_0, window_bounds = array<i64: 2, 8, 32>}, {pipeline_mode = #tpu.pipeline_mode<synchronous>, transform_indices = @transform_1, window_bounds = array<i64: 32, 96>}, {pipeline_mode = #tpu.pipeline_mode<synchronous>, transform_indices = @transform_2, window_bounds = array<i64: 32, 32>}, {pipeline_mode = #tpu.pipeline_mode<synchronous>, transform_indices = @transform_3, window_bounds = array<i64: 32, 128>}, {pipeline_mode = #tpu.pipeline_mode<synchronous>, transform_indices = @transform_4, window_bounds = array<i64: 128, 32>}, {pipeline_mode = #tpu.pipeline_mode<synchronous>, transform_indices = @transform_5, window_bounds = array<i64: 7, 128>}, {pipeline_mode = #tpu.pipeline_mode<synchronous>, transform_indices = @transform_6, window_bounds = array<i64: 4, 128>}]} {
    %c0 = arith.constant 0 : index
    %c0_0 = arith.constant 0 : index
    %c0_1 = arith.constant 0 : index
    %0 = vector.load %arg1[%c0, %c0_0, %c0_1] : memref<2x8x32xf32, #tpu.memory_space<vmem>>, vector<2x8x32xf32>
    %1 = vector.shape_cast %0 : vector<2x8x32xf32> to vector<16x32xf32>
    %c0_2 = arith.constant 0 : index
    %c0_3 = arith.constant 0 : index
    %2 = vector.load %arg6[%c0_2, %c0_3] : memref<7x128xf32, #tpu.memory_space<vmem>>, vector<1x32xf32>
    %c1 = arith.constant 1 : index
    %c0_4 = arith.constant 0 : index
    %3 = vector.load %arg6[%c1, %c0_4] : memref<7x128xf32, #tpu.memory_space<vmem>>, vector<1x32xf32>
    %c2 = arith.constant 2 : index
    %c0_5 = arith.constant 0 : index
    %4 = vector.load %arg6[%c2, %c0_5] : memref<7x128xf32, #tpu.memory_space<vmem>>, vector<1x32xf32>
    %c3 = arith.constant 3 : index
    %c0_6 = arith.constant 0 : index
    %5 = vector.load %arg6[%c3, %c0_6] : memref<7x128xf32, #tpu.memory_space<vmem>>, vector<1x32xf32>
    %c4 = arith.constant 4 : index
    %c0_7 = arith.constant 0 : index
    %6 = vector.load %arg6[%c4, %c0_7] : memref<7x128xf32, #tpu.memory_space<vmem>>, vector<1x32xf32>
    %c5 = arith.constant 5 : index
    %c0_8 = arith.constant 0 : index
    %7 = vector.load %arg6[%c5, %c0_8] : memref<7x128xf32, #tpu.memory_space<vmem>>, vector<1x32xf32>
    %c6 = arith.constant 6 : index
    %c0_9 = arith.constant 0 : index
    %8 = vector.load %arg6[%c6, %c0_9] : memref<7x128xf32, #tpu.memory_space<vmem>>, vector<1x128xf32>
    %cst = arith.constant dense<0.000000e+00> : vector<16xf32>
    %9 = vector.multi_reduction <add>, %1, %cst [1] : vector<16x32xf32> to vector<16xf32>
    %10 = vector.shape_cast %9 : vector<16xf32> to vector<16x1xf32>
    %cst_10 = arith.constant 3.200000e+01 : f32
    %11 = vector.broadcast %cst_10 : f32 to vector<16x1xf32>
    %12 = arith.divf %10, %11 : vector<16x1xf32>
    %13 = vector.broadcast %12 : vector<16x1xf32> to vector<16x32xf32>
    %14 = arith.subf %1, %13 : vector<16x32xf32>
    %15 = arith.mulf %14, %14 : vector<16x32xf32>
    %cst_11 = arith.constant dense<0.000000e+00> : vector<16xf32>
    %16 = vector.multi_reduction <add>, %15, %cst_11 [1] : vector<16x32xf32> to vector<16xf32>
    %17 = vector.shape_cast %16 : vector<16xf32> to vector<16x1xf32>
    %cst_12 = arith.constant 3.200000e+01 : f32
    %18 = vector.broadcast %cst_12 : f32 to vector<16x1xf32>
    %19 = arith.divf %17, %18 : vector<16x1xf32>
    %20 = vector.broadcast %12 : vector<16x1xf32> to vector<16x32xf32>
    %21 = arith.subf %1, %20 : vector<16x32xf32>
    %cst_13 = arith.constant 9.99999974E-6 : f32
    %22 = vector.broadcast %cst_13 : f32 to vector<16x1xf32>
    %23 = arith.addf %19, %22 : vector<16x1xf32>
    %24 = math.rsqrt %23 : vector<16x1xf32>
    %25 = vector.broadcast %24 : vector<16x1xf32> to vector<16x32xf32>
    %26 = arith.mulf %21, %25 : vector<16x32xf32>
    %27 = vector.broadcast %2 : vector<1x32xf32> to vector<16x32xf32>
    %28 = arith.mulf %26, %27 : vector<16x32xf32>
    %29 = vector.broadcast %3 : vector<1x32xf32> to vector<16x32xf32>
    %30 = arith.addf %28, %29 : vector<16x32xf32>
    %c0_14 = arith.constant 0 : index
    %c0_15 = arith.constant 0 : index
    %31 = vector.load %arg2[%c0_14, %c0_15] : memref<32x96xf32, #tpu.memory_space<vmem>>, vector<32x96xf32>
    %cst_16 = arith.constant dense<0.000000e+00> : vector<16x96xf32>
    %32 = tpu.matmul %30, %31, %cst_16 {dimension_numbers = #tpu.dot_dimension_numbers<[1], [0], [0], [1], [0, 0, 1, 1], [], []>} : vector<16x32xf32>, vector<32x96xf32>, vector<16x96xf32> -> vector<16x96xf32>
    %33 = vector.extract_strided_slice %32 {offsets = [0, 0], sizes = [16, 32], strides = [1, 1]} : vector<16x96xf32> to vector<16x32xf32>
    %34 = vector.extract_strided_slice %33 {offsets = [0, 0], sizes = [16, 8], strides = [1, 1]} : vector<16x32xf32> to vector<16x8xf32>
    %35 = vector.shape_cast %34 : vector<16x8xf32> to vector<2x8x8xf32>
    %36 = vector.extract_strided_slice %33 {offsets = [0, 8], sizes = [16, 8], strides = [1, 1]} : vector<16x32xf32> to vector<16x8xf32>
    %37 = vector.shape_cast %36 : vector<16x8xf32> to vector<2x8x8xf32>
    %38 = vector.extract_strided_slice %33 {offsets = [0, 16], sizes = [16, 8], strides = [1, 1]} : vector<16x32xf32> to vector<16x8xf32>
    %39 = vector.shape_cast %38 : vector<16x8xf32> to vector<2x8x8xf32>
    %40 = vector.extract_strided_slice %33 {offsets = [0, 24], sizes = [16, 8], strides = [1, 1]} : vector<16x32xf32> to vector<16x8xf32>
    %41 = vector.shape_cast %40 : vector<16x8xf32> to vector<2x8x8xf32>
    %42 = tpu.concatenate %35, %37, %39, %41 in 0 : vector<2x8x8xf32>, vector<2x8x8xf32>, vector<2x8x8xf32>, vector<2x8x8xf32> -> vector<8x8x8xf32>
    %43 = vector.extract_strided_slice %32 {offsets = [0, 32], sizes = [16, 32], strides = [1, 1]} : vector<16x96xf32> to vector<16x32xf32>
    %44 = vector.extract_strided_slice %43 {offsets = [0, 0], sizes = [16, 8], strides = [1, 1]} : vector<16x32xf32> to vector<16x8xf32>
    %45 = vector.shape_cast %44 : vector<16x8xf32> to vector<2x8x8xf32>
    %46 = vector.extract_strided_slice %43 {offsets = [0, 8], sizes = [16, 8], strides = [1, 1]} : vector<16x32xf32> to vector<16x8xf32>
    %47 = vector.shape_cast %46 : vector<16x8xf32> to vector<2x8x8xf32>
    %48 = vector.extract_strided_slice %43 {offsets = [0, 16], sizes = [16, 8], strides = [1, 1]} : vector<16x32xf32> to vector<16x8xf32>
    %49 = vector.shape_cast %48 : vector<16x8xf32> to vector<2x8x8xf32>
    %50 = vector.extract_strided_slice %43 {offsets = [0, 24], sizes = [16, 8], strides = [1, 1]} : vector<16x32xf32> to vector<16x8xf32>
    %51 = vector.shape_cast %50 : vector<16x8xf32> to vector<2x8x8xf32>
    %52 = tpu.concatenate %45, %47, %49, %51 in 0 : vector<2x8x8xf32>, vector<2x8x8xf32>, vector<2x8x8xf32>, vector<2x8x8xf32> -> vector<8x8x8xf32>
    %53 = vector.extract_strided_slice %32 {offsets = [0, 64], sizes = [16, 32], strides = [1, 1]} : vector<16x96xf32> to vector<16x32xf32>
    %54 = vector.extract_strided_slice %53 {offsets = [0, 0], sizes = [16, 8], strides = [1, 1]} : vector<16x32xf32> to vector<16x8xf32>
    %55 = vector.shape_cast %54 : vector<16x8xf32> to vector<2x8x8xf32>
    %56 = vector.extract_strided_slice %53 {offsets = [0, 8], sizes = [16, 8], strides = [1, 1]} : vector<16x32xf32> to vector<16x8xf32>
    %57 = vector.shape_cast %56 : vector<16x8xf32> to vector<2x8x8xf32>
    %58 = vector.extract_strided_slice %53 {offsets = [0, 16], sizes = [16, 8], strides = [1, 1]} : vector<16x32xf32> to vector<16x8xf32>
    %59 = vector.shape_cast %58 : vector<16x8xf32> to vector<2x8x8xf32>
    %60 = vector.extract_strided_slice %53 {offsets = [0, 24], sizes = [16, 8], strides = [1, 1]} : vector<16x32xf32> to vector<16x8xf32>
    %61 = vector.shape_cast %60 : vector<16x8xf32> to vector<2x8x8xf32>
    %62 = tpu.concatenate %55, %57, %59, %61 in 0 : vector<2x8x8xf32>, vector<2x8x8xf32>, vector<2x8x8xf32>, vector<2x8x8xf32> -> vector<8x8x8xf32>
    "tpu.trace_start"() <{level = 10 : i32, message = "nqd,nkd->nqk"}> : () -> ()
    %cst_17 = arith.constant dense<0.000000e+00> : vector<8x8x8xf32>
    %63 = tpu.matmul %42, %52, %cst_17 {dimension_numbers = #tpu.dot_dimension_numbers<[2], [2], [1], [1], [0, 0, 0, 1, 1, 1], [0], [0]>} : vector<8x8x8xf32>, vector<8x8x8xf32>, vector<8x8x8xf32> -> vector<8x8x8xf32>
    "tpu.trace_stop"() : () -> ()
    %cst_18 = arith.constant dense<0xFF800000> : vector<8x8xf32>
    %64 = vector.multi_reduction <maximumf>, %63, %cst_18 [2] : vector<8x8x8xf32> to vector<8x8xf32>
    %65 = vector.shape_cast %64 : vector<8x8xf32> to vector<8x8x1xf32>
    %66 = vector.broadcast %65 : vector<8x8x1xf32> to vector<8x8x8xf32>
    %67 = arith.subf %63, %66 : vector<8x8x8xf32>
    %68 = math.exp %67 : vector<8x8x8xf32>
    %cst_19 = arith.constant dense<0.000000e+00> : vector<8x8xf32>
    %69 = vector.multi_reduction <add>, %68, %cst_19 [2] : vector<8x8x8xf32> to vector<8x8xf32>
    %70 = vector.shape_cast %69 : vector<8x8xf32> to vector<8x8x1xf32>
    %71 = tpu.reciprocal %70 {approx = true} : vector<8x8x1xf32> -> vector<8x8x1xf32>
    %72 = vector.broadcast %71 : vector<8x8x1xf32> to vector<8x8x8xf32>
    %73 = arith.mulf %68, %72 : vector<8x8x8xf32>
    "tpu.trace_start"() <{level = 10 : i32, message = "nqk,nkd->nqd"}> : () -> ()
    %cst_20 = arith.constant dense<0.000000e+00> : vector<8x8x8xf32>
    %74 = tpu.matmul %73, %62, %cst_20 {dimension_numbers = #tpu.dot_dimension_numbers<[2], [1], [1], [2], [0, 0, 0, 1, 1, 2], [0], [0]>} : vector<8x8x8xf32>, vector<8x8x8xf32>, vector<8x8x8xf32> -> vector<8x8x8xf32>
    "tpu.trace_stop"() : () -> ()
    %75 = vector.extract_strided_slice %74 {offsets = [0, 0, 0], sizes = [2, 8, 8], strides = [1, 1, 1]} : vector<8x8x8xf32> to vector<2x8x8xf32>
    %76 = vector.extract_strided_slice %74 {offsets = [2, 0, 0], sizes = [2, 8, 8], strides = [1, 1, 1]} : vector<8x8x8xf32> to vector<2x8x8xf32>
    %77 = vector.extract_strided_slice %74 {offsets = [4, 0, 0], sizes = [2, 8, 8], strides = [1, 1, 1]} : vector<8x8x8xf32> to vector<2x8x8xf32>
    %78 = vector.extract_strided_slice %74 {offsets = [6, 0, 0], sizes = [2, 8, 8], strides = [1, 1, 1]} : vector<8x8x8xf32> to vector<2x8x8xf32>
    %79 = tpu.concatenate %75, %76, %77, %78 in 2 : vector<2x8x8xf32>, vector<2x8x8xf32>, vector<2x8x8xf32>, vector<2x8x8xf32> -> vector<2x8x32xf32>
    %80 = vector.shape_cast %79 : vector<2x8x32xf32> to vector<16x32xf32>
    %c0_21 = arith.constant 0 : index
    %c0_22 = arith.constant 0 : index
    %81 = vector.load %arg3[%c0_21, %c0_22] : memref<32x32xf32, #tpu.memory_space<vmem>>, vector<32x32xf32>
    %cst_23 = arith.constant dense<0.000000e+00> : vector<16x32xf32>
    %82 = tpu.matmul %80, %81, %cst_23 {dimension_numbers = #tpu.dot_dimension_numbers<[1], [0], [0], [1], [0, 0, 1, 1], [], []>} : vector<16x32xf32>, vector<32x32xf32>, vector<16x32xf32> -> vector<16x32xf32>
    %83 = vector.broadcast %4 : vector<1x32xf32> to vector<16x32xf32>
    %84 = arith.addf %82, %83 : vector<16x32xf32>
    %85 = arith.addf %1, %84 : vector<16x32xf32>
    %cst_24 = arith.constant dense<0.000000e+00> : vector<16xf32>
    %86 = vector.multi_reduction <add>, %85, %cst_24 [1] : vector<16x32xf32> to vector<16xf32>
    %87 = vector.shape_cast %86 : vector<16xf32> to vector<16x1xf32>
    %cst_25 = arith.constant 3.200000e+01 : f32
    %88 = vector.broadcast %cst_25 : f32 to vector<16x1xf32>
    %89 = arith.divf %87, %88 : vector<16x1xf32>
    %90 = vector.broadcast %89 : vector<16x1xf32> to vector<16x32xf32>
    %91 = arith.subf %85, %90 : vector<16x32xf32>
    %92 = arith.mulf %91, %91 : vector<16x32xf32>
    %cst_26 = arith.constant dense<0.000000e+00> : vector<16xf32>
    %93 = vector.multi_reduction <add>, %92, %cst_26 [1] : vector<16x32xf32> to vector<16xf32>
    %94 = vector.shape_cast %93 : vector<16xf32> to vector<16x1xf32>
    %cst_27 = arith.constant 3.200000e+01 : f32
    %95 = vector.broadcast %cst_27 : f32 to vector<16x1xf32>
    %96 = arith.divf %94, %95 : vector<16x1xf32>
    %97 = vector.broadcast %89 : vector<16x1xf32> to vector<16x32xf32>
    %98 = arith.subf %85, %97 : vector<16x32xf32>
    %cst_28 = arith.constant 9.99999974E-6 : f32
    %99 = vector.broadcast %cst_28 : f32 to vector<16x1xf32>
    %100 = arith.addf %96, %99 : vector<16x1xf32>
    %101 = math.rsqrt %100 : vector<16x1xf32>
    %102 = vector.broadcast %101 : vector<16x1xf32> to vector<16x32xf32>
    %103 = arith.mulf %98, %102 : vector<16x32xf32>
    %104 = vector.broadcast %5 : vector<1x32xf32> to vector<16x32xf32>
    %105 = arith.mulf %103, %104 : vector<16x32xf32>
    %106 = vector.broadcast %6 : vector<1x32xf32> to vector<16x32xf32>
    %107 = arith.addf %105, %106 : vector<16x32xf32>
    %c0_29 = arith.constant 0 : index
    %c0_30 = arith.constant 0 : index
    %108 = vector.load %arg4[%c0_29, %c0_30] : memref<32x128xf32, #tpu.memory_space<vmem>>, vector<32x128xf32>
    %cst_31 = arith.constant dense<0.000000e+00> : vector<16x128xf32>
    %109 = tpu.matmul %107, %108, %cst_31 {dimension_numbers = #tpu.dot_dimension_numbers<[1], [0], [0], [1], [0, 0, 1, 1], [], []>} : vector<16x32xf32>, vector<32x128xf32>, vector<16x128xf32> -> vector<16x128xf32>
    %110 = vector.broadcast %8 : vector<1x128xf32> to vector<16x128xf32>
    %111 = arith.addf %109, %110 : vector<16x128xf32>
    %cst_32 = arith.constant 5.000000e-01 : f32
    %112 = vector.broadcast %cst_32 : f32 to vector<16x128xf32>
    %113 = arith.mulf %112, %111 : vector<16x128xf32>
    %cst_33 = arith.constant 0.707106769 : f32
    %114 = vector.broadcast %cst_33 : f32 to vector<16x128xf32>
    %115 = arith.mulf %111, %114 : vector<16x128xf32>
    %116 = math.erf %115 : vector<16x128xf32>
    %cst_34 = arith.constant 1.000000e+00 : f32
    %117 = vector.broadcast %cst_34 : f32 to vector<16x128xf32>
    %118 = arith.addf %117, %116 : vector<16x128xf32>
    %119 = arith.mulf %113, %118 : vector<16x128xf32>
    %c0_35 = arith.constant 0 : index
    %c0_36 = arith.constant 0 : index
    %120 = vector.load %arg5[%c0_35, %c0_36] : memref<128x32xf32, #tpu.memory_space<vmem>>, vector<128x32xf32>
    %cst_37 = arith.constant dense<0.000000e+00> : vector<16x32xf32>
    %121 = tpu.matmul %119, %120, %cst_37 {dimension_numbers = #tpu.dot_dimension_numbers<[1], [0], [0], [1], [0, 0, 1, 1], [], []>} : vector<16x128xf32>, vector<128x32xf32>, vector<16x32xf32> -> vector<16x32xf32>
    %122 = vector.broadcast %7 : vector<1x32xf32> to vector<16x32xf32>
    %123 = arith.addf %121, %122 : vector<16x32xf32>
    %124 = arith.addf %85, %123 : vector<16x32xf32>
    %125 = vector.shape_cast %124 : vector<16x32xf32> to vector<4x4x32xf32>
    %126 = vector.extract_strided_slice %125 {offsets = [0, 0, 0], sizes = [4, 1, 32], strides = [1, 1, 1]} : vector<4x4x32xf32> to vector<4x1x32xf32>
    %127 = vector.shape_cast %126 : vector<4x1x32xf32> to vector<4x32xf32>
    %128 = vector.extract_strided_slice %125 {offsets = [0, 1, 0], sizes = [4, 1, 32], strides = [1, 1, 1]} : vector<4x4x32xf32> to vector<4x1x32xf32>
    %129 = vector.shape_cast %128 : vector<4x1x32xf32> to vector<4x32xf32>
    %130 = vector.extract_strided_slice %125 {offsets = [0, 2, 0], sizes = [4, 1, 32], strides = [1, 1, 1]} : vector<4x4x32xf32> to vector<4x1x32xf32>
    %131 = vector.shape_cast %130 : vector<4x1x32xf32> to vector<4x32xf32>
    %132 = vector.extract_strided_slice %125 {offsets = [0, 3, 0], sizes = [4, 1, 32], strides = [1, 1, 1]} : vector<4x4x32xf32> to vector<4x1x32xf32>
    %133 = vector.shape_cast %132 : vector<4x1x32xf32> to vector<4x32xf32>
    %134 = tpu.concatenate %127, %129, %131, %133 in 1 : vector<4x32xf32>, vector<4x32xf32>, vector<4x32xf32>, vector<4x32xf32> -> vector<4x128xf32>
    %c0_38 = arith.constant 0 : index
    %c0_39 = arith.constant 0 : index
    %135 = vector.load %arg7[%c0_38, %c0_39] : memref<4x128xf32, #tpu.memory_space<vmem>>, vector<4x128xf32>
    tpu.vector_store %arg7[%c0_38, %c0_39], %134 {strides = array<i32>} : memref<4x128xf32, #tpu.memory_space<vmem>>, vector<4x128xf32>,
    return
  }
  func.func @transform_0(%arg0: i32) -> (i32, i32, i32) {
    %c0_i32 = arith.constant 0 : i32
    %c0_i32_0 = arith.constant 0 : i32
    %c0_i32_1 = arith.constant 0 : i32
    %c0_i32_2 = arith.constant 0 : i32
    return %c0_i32, %c0_i32_0, %c0_i32_1 : i32, i32, i32
  }
  func.func @transform_1(%arg0: i32) -> (i32, i32) {
    %c0_i32 = arith.constant 0 : i32
    %c0_i32_0 = arith.constant 0 : i32
    %c0_i32_1 = arith.constant 0 : i32
    return %c0_i32, %c0_i32_0 : i32, i32
  }
  func.func @transform_2(%arg0: i32) -> (i32, i32) {
    %c0_i32 = arith.constant 0 : i32
    %c0_i32_0 = arith.constant 0 : i32
    %c0_i32_1 = arith.constant 0 : i32
    return %c0_i32, %c0_i32_0 : i32, i32
  }
  func.func @transform_3(%arg0: i32) -> (i32, i32) {
    %c0_i32 = arith.constant 0 : i32
    %c0_i32_0 = arith.constant 0 : i32
    %c0_i32_1 = arith.constant 0 : i32
    return %c0_i32, %c0_i32_0 : i32, i32
  }
  func.func @transform_4(%arg0: i32) -> (i32, i32) {
    %c0_i32 = arith.constant 0 : i32
    %c0_i32_0 = arith.constant 0 : i32
    %c0_i32_1 = arith.constant 0 : i32
    return %c0_i32, %c0_i32_0 : i32, i32
  }
  func.func @transform_5(%arg0: i32) -> (i32, i32) {
    %c0_i32 = arith.constant 0 : i32
    %c0_i32_0 = arith.constant 0 : i32
    %c0_i32_1 = arith.constant 0 : i32
    return %c0_i32, %c0_i32_0 : i32, i32
  }
  func.func @transform_6(%arg0: i32) -> (i32, i32) {
    %c0_i32 = arith.constant 0 : i32
    %c0_i32_0 = arith.constant 0 : i32
    %c0_i32_1 = arith.constant 0 : i32
    return %c0_i32, %c0_i32_0 : i32, i32
  }
}

</mosaic_0001>

<bundles_post_ra>
// kernel: tpu_custom_call.1
= control target key start
LH: loop header
LB: loop body
LE: loop exit
PB: predicated region body
PF: predicated region fallthrough
CT: control target
= control target key end

     0   :  { %vm33_vm0 = vcmask 261120   ;;  %s1474_s0 = inlined_call_operand.vmem [shape: f32[2,8,32], index: 0, kind: input, shape index: {}]   ;;  %s1475_s1 = inlined_call_operand.vmem [shape: f32[32,96], index: 1, kind: input, shape index: {}]   ;;  %s1476_s2 = inlined_call_operand.vmem [shape: f32[32,32], index: 2, kind: input, shape index: {}]   ;;  %s1477_s3 = inlined_call_operand.vmem [shape: f32[32,128], index: 3, kind: input, shape index: {}]   ;;  %s1478_s4 = inlined_call_operand.vmem [shape: f32[128,32], index: 4, kind: input, shape index: {}]   ;;  %s1479_s5 = inlined_call_operand.vmem [shape: f32[7,128], index: 5, kind: input, shape index: {}]   ;;  %s1480_s6 = inlined_call_operand.hbm [shape: f32[4,128], index: 6, kind: output, shape index: {}]  }
   0x1   :  { %v1178_v0 = vld [vmem:[%s1474_s0] sm:$0xff] }
   0x2   :  { %v34_v1 = vsel %vm33_vm0, %v1178_v0, 0.0 }
   0x3   :  { %35 = vadd.xlane.f32.xlu0 %v34_v1 }
   0x4   :  { %11 = vsyncpa [#allocation3], 0  ;;  %v1185_v2 = vld [vmem:[%s1474_s0 + $0x8] sm:$0xff]  ;;  %v1129_v4 = vmov 32.0   ;;  %v94_v21 = vld [vmem:[%s1475_s1 + $0x18] sm:$0xff]  ;;  %s1130_s11 = smov 120  }
   0x5   :  { %v37_v3 = vsel %vm33_vm0, %v1185_v2, 0.0  ;;  %1057 = vrcp.f32 %v1129_v4  ;;  %113 = vmatpush.msra.mxu0 %v94_v21  ;;  %v93_v22 = vld [vmem:[%s1475_s1 + $0x10] sm:$0xff]  ;;  %v92_v23 = vld [vmem:[%s1475_s1 + $0x8] sm:$0xff]  ;;  %v91_v24 = vld [vmem:[%s1475_s1] sm:$0xff]  ;;  %s1131_s12 = smov 112   ;;  %s1132_s13 = smov 96  }
   0x6   :  { %v1050_v39 = vld [vmem:[%s1479_s5] ss:$0 sm:$0xff]  ;;  %v1051_v43 = vld [vmem:[%s1479_s5 + $0x1] ss:$0 sm:$0xff]  ;;  %s1133_s14 = smov 104   ;;  %vm140_vm8 = vcmask 64512  }
   0x7   :  { %114 = vmatpush.msra.mxu0 %v93_v22  ;;  %s1134_s15 = smov 64   ;;  %s1135_s16 = smov 8   ;;  %vm669_vm9 = vcmask 130048   ;;  %vm672_vm10 = vcmask 195584  }
   0x8   :  { %s1136_s19 = smov 24   ;;  %s1137_s20 = smov 16  }
   0x9   :  { %115 = vmatpush.msra.mxu0 %v92_v23  ;;  %s1139_s24 = smov [#allocation2]   ;;  %s983_s26 = sshll.u32 %s1480_s6, 4  ;;  %s984_s26 = int_to_ptr.hbm [resolvable:$true] %s983_s26 }
   0xa   :  { %s981_s0 = sshll.u32 %s1139_s24, 4  ;;  %s982_s0 = int_to_ptr.vmem [resolvable:$true] %s981_s0 }
   0xb   :  { %38 = vadd.xlane.f32.xlu0 %v37_v3  ;;  %v1058_v5 = vpop.eup %1057  ;;  %116 = vmatpush.msra.mxu0 %v91_v24 }
   0xc   :  { %v41_v6 = vmul.f32 32.0, %v1058_v5  ;;  %vm45_vm1 = vweird.f32 %v1058_v5 }
   0xe   :  { %v42_v7 = vsub.f32 1.0, %v41_v6 }
  0x10   :  { %v43_v8 = vmul.f32 %v1058_v5, %v42_v7 }
  0x12   :  { %v44_v9 = vadd.f32 %v1058_v5, %v43_v8 }
  0x14   :  { %v1189_v10 = vsel %vm45_vm1, %v1058_v5, %v44_v9 }
  0x76   :  { %v36_v11 = vpop.xlane.xlu0 %35 }
  0x77   :  { %v47_v12 = vmul.f32 %v1189_v10, %v36_v11 }
  0x79   :  { %v49_v13 = vsub.f32 %v1178_v0, %v47_v12 }
  0x7b   :  { %v51_v14 = vmul.f32 %v49_v13, %v49_v13 }
  0x7d   :  { %v53_v15 = vsel %vm33_vm0, %v51_v14, 0.0 }
  0x7e   :  { %54 = vadd.xlane.f32.xlu1 %v53_v15  ;;  %v39_v16 = vpop.xlane.xlu0 %38 }
  0x7f   :  { %v48_v17 = vmul.f32 %v1189_v10, %v39_v16 }
  0x81   :  { %v50_v18 = vsub.f32 %v1185_v2, %v48_v17 }
  0x83   :  { %v52_v19 = vmul.f32 %v50_v18, %v50_v18 }
  0x85   :  { %v56_v20 = vsel %vm33_vm0, %v52_v19, 0.0 }
  0x86   :  { %57 = vadd.xlane.f32.xlu1 %v56_v20 }
  0xf1   :  { %v55_v25 = vpop.xlane.xlu1 %54 }
  0xf2   :  { %v59_v26 = vmul.f32 %v55_v25, %v1189_v10 }
  0xf4   :  { %v61_v27 = vadd.f32 1e-05, %v59_v26 }
  0xf6   :  { %1059 = vrsqrt.f32 %v61_v27  ;;  %vm69_vm3 = vweird.f32 %v61_v27 }
  0xf9   :  { %v58_v28 = vpop.xlane.xlu1 %57 }
  0xfa   :  { %v60_v29 = vmul.f32 %v58_v28, %v1189_v10 }
  0xfc   :  { %v1060_v30 = vpop.eup %1059  ;;  %v62_v31 = vadd.f32 1e-05, %v60_v29 }
  0xfd   :  { %v64_v32 = vmul.f32 %v1060_v30, %v61_v27  ;;  %vm70_vm2 = vweird.f32 %v1060_v30 }
  0xfe   :  { %1061 = vrsqrt.f32 %v62_v31  ;;  %vm71_vm4 = vmor %vm69_vm3, %vm70_vm2  ;;  %vm79_vm6 = vweird.f32 %v62_v31 }
  0xff   :  { %v65_v33 = vmul.f32 %v1060_v30, %v64_v32 }
 0x101   :  { %v66_v34 = vmul.f32 0.5, %v65_v33 }
 0x103   :  { %v67_v35 = vsub.f32 1.5, %v66_v34 }
 0x104   :  { %v1062_v36 = vpop.eup %1061 }
 0x105   :  { %v68_v37 = vmul.f32 %v1060_v30, %v67_v35  ;;  %v74_v38 = vmul.f32 %v1062_v36, %v62_v31  ;;  %vm80_vm5 = vweird.f32 %v1062_v36 }
 0x106   :  { %vm81_vm7 = vmor %vm79_vm6, %vm80_vm5 }
 0x107   :  { %v72_v40 = vsel %vm71_vm4, %v1060_v30, %v68_v37  ;;  %v75_v41 = vmul.f32 %v1062_v36, %v74_v38 }
 0x108   :  { %v83_v42 = vmul.f32 %v72_v40, %v49_v13 }
 0x109   :  { %v76_v44 = vmul.f32 0.5, %v75_v41 }
 0x10a   :  { %v86_v45 = vmul.f32 %v1050_v39, %v83_v42 }
 0x10b   :  { %v77_v46 = vsub.f32 1.5, %v76_v44 }
 0x10c   :  { %v89_v47 = vadd.f32 %v1051_v43, %v86_v45 }
 0x10d   :  { %v78_v48 = vmul.f32 %v1062_v36, %v77_v46 }
 0x10e   :  { %992 = vmatmul.msk.f32.vlgmr.msra.gmra.mxu0 %vm33_vm0, %v89_v47 }
 0x10f   :  { %v82_v49 = vsel %vm81_vm7, %v1062_v36, %v78_v48 }
 0x110   :  { %v84_v50 = vmul.f32 %v82_v49, %v50_v18 }
 0x112   :  { %v87_v51 = vmul.f32 %v1050_v39, %v84_v50 }
 0x114   :  { %v90_v52 = vadd.f32 %v1051_v43, %v87_v51 }
 0x116   :  { %993 = vmatmul.msk.f32.gmra.mxu0 %vm33_vm0, %v90_v52 }
 0x18b   :  { %v1219_v53 = vpop.f32.mrf.mxu0 }
 0x18c   :  { %126 = vrot.lane.b32.xlu2 %v1219_v53, %s1130_s11  ;;  %130 = vrot.lane.b32.xlu1 %v1219_v53, %s1131_s12 }
 0x193   :  { %v1223_v54 = vpop.f32.mrf.mxu0 }
 0x194   :  { %132 = vrot.lane.b32.xlu0 %v1223_v54, %s1131_s12  ;;  %128 = vrot.lane.b32.xlu2 %v1223_v54, %s1130_s11 }
 0x19c   :  { %165 = vrot.lane.b32.xlu0 %v1223_v54, %s1132_s13  ;;  %134 = vrot.lane.b32.xlu2 %v1219_v53, %s1133_s14 }
 0x1a4   :  { %136 = vrot.lane.b32.xlu2 %v1223_v54, %s1133_s14 }
 0x1ac   :  { %138 = vrot.lane.b32.xlu2 %v1219_v53, %s1132_s13 }
 0x1e6   :  { %v1233_v55 = vpop.permute.xlu2 %126 }
 0x1e7   :  { %191 = vrot.lane.b32.xlu2 %v1233_v55, %s1132_s13  ;;  %v1035_v34 = vpack.i.bf16 %v1233_v55, %v1219_v53 }
 0x1ee   :  { %v1237_v56 = vpop.permute.xlu2 %128 }
 0x1ef   :  { %217 = vrot.lane.b32.xlu1 %v1237_v56, %s1132_s13 }
 0x1f6   :  { %v1241_v57 = vpop.permute.xlu2 %134 }
 0x1f7   :  { %295 = vrot.lane.b32.xlu1 %v1241_v57, %s1132_s13  ;;  %v1045_v43 = vpack.i.bf16 %v1241_v57, %v1223_v54 }
 0x1fe   :  { %v1245_v58 = vpop.permute.xlu2 %136  ;;  %v1247_v59 = vpop.permute.xlu1 %130 }
 0x1ff   :  { %243 = vrot.lane.b32.xlu2 %v1247_v59, %s1132_s13 }
 0x206   :  { %v1251_v60 = vpop.permute.xlu0 %132  ;;  %v139_v61 = vpop.permute.xlu2 %138 }
 0x207   :  { %269 = vrot.lane.b32.xlu0 %v1251_v60, %s1132_s13  ;;  %994 = vmatpush.xpose.msk.msra.mxu2 %vm140_vm8, %v139_v61 }
 0x20a   :  { %995 = vmatmul.msk.f32.vlgmr.msra.gmra.mxu2 %vm140_vm8, %v1219_v53 }
 0x20e   :  { %v166_v62 = vpop.permute.xlu0 %165 }
 0x20f   :  { %321 = vrot.lane.b32.xlu0 %v1245_v58, %s1132_s13  ;;  %996 = vmatpush.xpose.msk.msrb.mxu2 %vm140_vm8, %v166_v62 }
 0x212   :  { %997 = vmatmul.msk.f32.vlgmr.msrb.gmra.mxu2 %vm140_vm8, %v1223_v54 }
 0x241   :  { %v192_v63 = vpop.permute.xlu2 %191 }
 0x242   :  { %998 = vmatpush.xpose.msk.msra.mxu3 %vm140_vm8, %v192_v63 }
 0x245   :  { %999 = vmatmul.msk.f32.vlgmr.msra.gmra.mxu3 %vm140_vm8, %v1233_v55 }
 0x259   :  { %v244_v3 = vpop.permute.xlu2 %243 }
 0x261   :  { %v218_v1 = vpop.permute.xlu1 %217 }
 0x262   :  { %1000 = vmatpush.xpose.msk.msra.mxu2 %vm140_vm8, %v218_v1 }
 0x265   :  { %1001 = vmatmul.msk.f32.vlgmr.msra.gmra.mxu2 %vm140_vm8, %v1237_v56 }
 0x266   :  { %1002 = vmatpush.xpose.msk.msrb.mxu2 %vm140_vm8, %v244_v3 }
 0x269   :  { %v296_v5 = vpop.permute.xlu1 %295 }
 0x26d   :  { %1003 = vmatmul.msk.f32.vlgmr.msrb.gmra.mxu2 %vm140_vm8, %v1247_v59 }
 0x279   :  { %v270_v4 = vpop.permute.xlu0 %269 }
 0x27a   :  { %1004 = vmatpush.xpose.msk.msrb.mxu3 %vm140_vm8, %v270_v4 }
 0x27d   :  { %1005 = vmatmul.msk.f32.vlgmr.msrb.gmra.mxu3 %vm140_vm8, %v1251_v60 }
 0x27e   :  { %1006 = vmatpush.xpose.msk.msra.mxu3 %vm140_vm8, %v296_v5 }
 0x281   :  { %v322_v6 = vpop.permute.xlu0 %321 }
 0x282   :  { %1008 = vmatpush.xpose.msk.msra.mxu2 %vm140_vm8, %v322_v6 }
 0x285   :  { %1007 = vmatmul.msk.f32.vlgmr.msra.gmra.mxu3 %vm140_vm8, %v1241_v57  ;;  %1009 = vmatmul.msk.f32.vlgmr.msra.gmra.mxu2 %vm140_vm8, %v1245_v58 }
 0x28d   :  { %v162_v7 = vpop.f32.mrf.mxu2 }
 0x28e   :  { %v347_v8 = vsel %vm140_vm8, %v162_v7, -inf }
 0x28f   :  { %348 = vmax.xlane.f32.xlu2 %v347_v8 }
 0x295   :  { %v188_v9 = vpop.f32.mrf.mxu2 }
 0x296   :  { %v350_v11 = vsel %vm140_vm8, %v188_v9, -inf }
 0x297   :  { %351 = vmax.xlane.f32.xlu1 %v350_v11 }
 0x2c8   :  { %v214_v12 = vpop.f32.mrf.mxu3 }
 0x2c9   :  { %v353_v13 = vsel %vm140_vm8, %v214_v12, -inf }
 0x2ca   :  { %354 = vmax.xlane.f32.xlu1 %v353_v13 }
 0x2e8   :  { %v240_v14 = vpop.f32.mrf.mxu2 }
 0x2e9   :  { %v356_v15 = vsel %vm140_vm8, %v240_v14, -inf }
 0x2ea   :  { %357 = vmax.xlane.f32.xlu2 %v356_v15 }
 0x2f0   :  { %v266_v16 = vpop.f32.mrf.mxu2 }
 0x2f1   :  { %v359_v30 = vsel %vm140_vm8, %v266_v16, -inf }
 0x300   :  { %v292_v17 = vpop.f32.mrf.mxu3 }
 0x301   :  { %v362_v18 = vsel %vm140_vm8, %v292_v17, -inf }
 0x302   :  { %363 = vmax.xlane.f32.xlu1 %v362_v18  ;;  %v349_v19 = vpop.xlane.xlu2 %348 }
 0x303   :  { %v371_v20 = vsub.f32 %v162_v7, %v349_v19 }
 0x305   :  { %v379_v21 = vmul.f32 1.442695, %v371_v20 }
 0x307   :  { %1063 = vpow2.f32 %v379_v21 }
 0x308   :  { %v1286_v22 = vpop.f32.mrf.mxu2  ;;  %v318_v32 = vpop.f32.mrf.mxu3 }
 0x309   :  { %v368_v23 = vsel %vm140_vm8, %v1286_v22, -inf  ;;  %v365_v33 = vsel %vm140_vm8, %v318_v32, -inf }
 0x30a   :  { %369 = vmax.xlane.f32.xlu2 %v368_v23  ;;  %v352_v24 = vpop.xlane.xlu1 %351 }
 0x30b   :  { %v372_v25 = vsub.f32 %v188_v9, %v352_v24 }
 0x30d   :  { %v1064_v26 = vpop.eup %1063  ;;  %v381_v27 = vmul.f32 1.442695, %v372_v25 }
 0x30e   :  { %v395_v28 = vsel %vm140_vm8, %v1064_v26, 0.0 }
 0x30f   :  { %1065 = vpow2.f32 %v381_v27  ;;  %396 = vadd.xlane.f32.xlu0 %v395_v28 }
 0x315   :  { %v1291_v29 = vpop.eup %1065 }
 0x316   :  { %v398_v31 = vsel %vm140_vm8, %v1291_v29, 0.0 }
 0x317   :  { %360 = vmax.xlane.f32.xlu0 %v359_v30  ;;  %399 = vadd.xlane.f32.xlu1 %v398_v31 }
 0x31f   :  { %366 = vmax.xlane.f32.xlu0 %v365_v33 }
 0x322   :  { %1036 = vrot.lane.b32.xlu2 %v1035_v34, %s1134_s15 }
 0x33d   :  { %v355_v35 = vpop.xlane.xlu1 %354 }
 0x33e   :  { %v373_v36 = vsub.f32 %v214_v12, %v355_v35 }
 0x340   :  { %v383_v37 = vmul.f32 1.442695, %v373_v36 }
 0x342   :  { %1067 = vpow2.f32 %v383_v37 }
 0x348   :  { %v1068_v38 = vpop.eup %1067 }
 0x349   :  { %v401_v39 = vsel %vm140_vm8, %v1068_v38, 0.0 }
 0x34b   :  { %402 = vadd.xlane.f32.xlu2 %v401_v39 }
 0x35d   :  { %v358_v40 = vpop.xlane.xlu2 %357 }
 0x35e   :  { %v374_v41 = vsub.f32 %v240_v14, %v358_v40  ;;  %v1040_v14 = vpack.i.bf16 %v1237_v56, %v1247_v59 }
 0x360   :  { %v385_v42 = vmul.f32 1.442695, %v374_v41 }
 0x362   :  { %1069 = vpow2.f32 %v385_v42 }
 0x363   :  { %1046 = vrot.lane.b32.xlu2 %v1045_v43, %s1134_s15 }
 0x368   :  { %v1304_v44 = vpop.eup %1069 }
 0x369   :  { %v404_v45 = vsel %vm140_vm8, %v1304_v44, 0.0 }
 0x36a   :  { %405 = vadd.xlane.f32.xlu0 %v404_v45 }
 0x36b   :  { %565 = vrot.lane.b32.xlu2 %v1251_v60, %s1134_s15 }
 0x375   :  { %v364_v52 = vpop.xlane.xlu1 %363 }
 0x376   :  { %v376_v57 = vsub.f32 %v292_v17, %v364_v52  ;;  %v675_v52 = vld [vmem:[%s1476_s2] sm:$0xff] }
 0x378   :  { %v389_v62 = vmul.f32 1.442695, %v376_v57 }
 0x37d   :  { %v370_v46 = vpop.xlane.xlu2 %369 }
 0x37e   :  { %v378_v3 = vsub.f32 %v1286_v22, %v370_v46 }
 0x380   :  { %v393_v6 = vmul.f32 1.442695, %v378_v3 }
 0x382   :  { %v397_v47 = vpop.xlane.xlu0 %396 }
 0x383   :  { %1071 = vrcp.f32 %v397_v47 }
 0x385   :  { %v1037_v48 = vpop.permute.xlu2 %1036 }
 0x386   :  { %v1038_v49 = vunpack.i.l.bf16 %v1037_v48  ;;  %v1039_v50 = vunpack.i.h.bf16 %v1037_v48 }
 0x388   :  { %456 = vmatpush.msrb.mxu3 %v1038_v49  ;;  %508 = vmatpush.msra.mxu1 %v1039_v50  ;;  %v677_v50 = vld [vmem:[%s1476_s2 + $0x10] sm:$0xff] }
 0x389   :  { %v1072_v51 = vpop.eup %1071 }
 0x38a   :  { %v427_v53 = vmul.f32 %v1072_v51, %v1064_v26  ;;  %v361_v54 = vpop.xlane.xlu0 %360  ;;  %v400_v15 = vpop.xlane.xlu1 %399  ;;  %v676_v51 = vld [vmem:[%s1476_s2 + $0x8] sm:$0xff] }
 0x38b   :  { %v375_v55 = vsub.f32 %v266_v16, %v361_v54 }
 0x38c   :  { %1010 = vmatmul.msk.f32.vlgmr.msrb.gmra.mxu3 %vm140_vm8, %v427_v53 }
 0x38d   :  { %v387_v61 = vmul.f32 1.442695, %v375_v55 }
 0x38f   :  { %1073 = vpow2.f32 %v387_v61 }
 0x390   :  { %1075 = vpow2.f32 %v389_v62 }
 0x392   :  { %v367_v60 = vpop.xlane.xlu0 %366 }
 0x393   :  { %v377_v63 = vsub.f32 %v318_v32, %v367_v60 }
 0x395   :  { %v1074_v1 = vpop.eup %1073  ;;  %v391_v4 = vmul.f32 1.442695, %v377_v63 }
 0x396   :  { %v407_v5 = vsel %vm140_vm8, %v1074_v1, 0.0  ;;  %v1076_v7 = vpop.eup %1075 }
 0x397   :  { %1077 = vpow2.f32 %v391_v4  ;;  %408 = vadd.xlane.f32.xlu1 %v407_v5  ;;  %v410_v11 = vsel %vm140_vm8, %v1076_v7, 0.0 }
 0x398   :  { %1079 = vpow2.f32 %v393_v6  ;;  %v1052_v6 = vld [vmem:[%s1479_s5 + $0x2] ss:$0 sm:$0xff] }
 0x399   :  { %1081 = vrcp.f32 %v400_v15 }
 0x39d   :  { %v1078_v8 = vpop.eup %1077 }
 0x39e   :  { %v413_v9 = vsel %vm140_vm8, %v1078_v8, 0.0  ;;  %v1080_v12 = vpop.eup %1079 }
 0x39f   :  { %414 = vadd.xlane.f32.xlu0 %v413_v9  ;;  %411 = vadd.xlane.f32.xlu1 %v410_v11  ;;  %v416_v13 = vsel %vm140_vm8, %v1080_v12, 0.0  ;;  %v1082_v17 = vpop.eup %1081 }
 0x3a0   :  { %v428_v23 = vmul.f32 %v1082_v17, %v1291_v29 }
 0x3a7   :  { %417 = vadd.xlane.f32.xlu1 %v416_v13 }
 0x3b3   :  { %1041 = vrot.lane.b32.xlu0 %v1040_v14, %s1134_s15 }
 0x3be   :  { %v403_v16 = vpop.xlane.xlu2 %402 }
 0x3bf   :  { %1083 = vrcp.f32 %v403_v16 }
 0x3c0   :  { %617 = vrot.lane.b32.xlu1 %v1245_v58, %s1134_s15 }
 0x3c5   :  { %v1084_v18 = vpop.eup %1083 }
 0x3c6   :  { %v1047_v19 = vpop.permute.xlu2 %1046  ;;  %v429_v20 = vmul.f32 %v1084_v18, %v1068_v38 }
 0x3c7   :  { %v1048_v21 = vunpack.i.l.bf16 %v1047_v19  ;;  %v1049_v22 = vunpack.i.h.bf16 %v1047_v19 }
 0x3c8   :  { %1012 = vmatmul.msk.f32.vlgmr.msra.gmra.mxu1 %vm140_vm8, %v429_v20 }
 0x3c9   :  { %482 = vmatpush.msrb.mxu0 %v1048_v21  ;;  %612 = vmatpush.msrb.mxu1 %v1049_v22 }
 0x3ca   :  { %1011 = vmatmul.msk.f32.vlgmr.msrb.gmra.mxu0 %vm140_vm8, %v428_v23 }
 0x3ce   :  { %v566_v56 = vpop.permute.xlu2 %565 }
 0x3cf   :  { %586 = vmatpush.msra.mxu0 %v566_v56  ;;  %v764_v56 = vld [vmem:[%s1477_s3 + $0x18] sm:$0xff] }
 0x3d1   :  { %784 = vmatpush.msrb.mxu0 %v764_v56  ;;  %v884_v56 = vld [vmem:[%s1478_s4 + $0x8] sm:$0xff] }
 0x3dd   :  { %v406_v59 = vpop.xlane.xlu0 %405 }
 0x40a   :  { %v409_v24 = vpop.xlane.xlu1 %408 }
 0x40f   :  { %v458_v46 = vpop.f32.mrf.mxu3 }
 0x412   :  { %v415_v25 = vpop.xlane.xlu0 %414  ;;  %v412_v58 = vpop.xlane.xlu1 %411 }
 0x413   :  { %1085 = vrcp.f32 %v415_v25  ;;  %v761_v25 = vld [vmem:[%s1477_s3] sm:$0xff] }
 0x414   :  { %1087 = vrcp.f32 %v412_v58 }
 0x415   :  { %1089 = vrcp.f32 %v406_v59  ;;  %v763_v59 = vld [vmem:[%s1477_s3 + $0x10] sm:$0xff] }
 0x416   :  { %1091 = vrcp.f32 %v409_v24  ;;  %785 = vmatpush.msrb.mxu0 %v763_v59  ;;  %v762_v24 = vld [vmem:[%s1477_s3 + $0x8] sm:$0xff] }
 0x418   :  { %786 = vmatpush.msrb.mxu0 %v762_v24 }
 0x419   :  { %v1086_v26 = vpop.eup %1085 }
 0x41a   :  { %v1088_v27 = vpop.eup %1087  ;;  %v433_v28 = vmul.f32 %v1086_v26, %v1078_v8  ;;  %v418_v33 = vpop.xlane.xlu1 %417  ;;  %787 = vmatpush.msrb.mxu0 %v761_v25  ;;  %v883_v25 = vld [vmem:[%s1478_s4] sm:$0xff] }
 0x41b   :  { %v432_v30 = vmul.f32 %v1088_v27, %v1076_v7  ;;  %v1090_v29 = vpop.eup %1089  ;;  %1093 = vrcp.f32 %v418_v33 }
 0x41c   :  { %1016 = vmatmul.msk.f32.vlgmr.msrb.gmra.mxu1 %vm140_vm8, %v433_v28  ;;  %v1092_v31 = vpop.eup %1091  ;;  %v430_v36 = vmul.f32 %v1090_v29, %v1304_v44  ;;  %v678_v44 = vld [vmem:[%s1476_s2 + $0x18] sm:$0xff] }
 0x41d   :  { %1015 = vmatmul.msk.f32.vlgmr.msra.gmra.mxu0 %vm140_vm8, %v432_v30  ;;  %v431_v37 = vmul.f32 %v1092_v31, %v1074_v1 }
 0x421   :  { %v1094_v38 = vpop.eup %1093 }
 0x422   :  { %v434_v39 = vmul.f32 %v1094_v38, %v1080_v12 }
 0x425   :  { %v1042_v32 = vpop.permute.xlu0 %1041 }
 0x426   :  { %v1044_v34 = vunpack.i.h.bf16 %v1042_v32  ;;  %v1043_v35 = vunpack.i.l.bf16 %v1042_v32 }
 0x428   :  { %534 = vmatpush.msrb.mxu2 %v1044_v34  ;;  %560 = vmatpush.msra.mxu3 %v1043_v35  ;;  %v1053_v34 = vld [vmem:[%s1479_s5 + $0x3] ss:$0 sm:$0xff] }
 0x429   :  { %1013 = vmatmul.msk.f32.vlgmr.msrb.gmra.mxu2 %vm140_vm8, %v430_v36  ;;  %1014 = vmatmul.msk.f32.vlgmr.msra.gmra.mxu3 %vm140_vm8, %v431_v37  ;;  %v1054_v37 = vld [vmem:[%s1479_s5 + $0x4] ss:$0 sm:$0xff] }
 0x42a   :  { %698 = vmatpush.msrb.mxu3 %v678_v44 }
 0x42c   :  { %699 = vmatpush.msrb.mxu3 %v677_v50 }
 0x42e   :  { %700 = vmatpush.msrb.mxu3 %v676_v51 }
 0x430   :  { %701 = vmatpush.msrb.mxu3 %v675_v52 }
 0x432   :  { %v618_v40 = vpop.permute.xlu1 %617 }
 0x433   :  { %638 = vmatpush.msra.mxu2 %v618_v40 }
 0x434   :  { %1017 = vmatmul.msk.f32.vlgmr.msra.gmra.mxu2 %vm140_vm8, %v434_v39 }
 0x445   :  { %v510_v41 = vpop.f32.mrf.mxu1 }
 0x446   :  { %645 = vrot.lane.b32.xlu0 %v510_v41, %s1135_s16 }
 0x447   :  { %v484_v42 = vpop.f32.mrf.mxu0 }
 0x499   :  { %v614_v43 = vpop.f32.mrf.mxu1 }
 0x49a   :  { %661 = vrot.lane.b32.xlu0 %v614_v43, %s1136_s19  ;;  %v588_v45 = vpop.f32.mrf.mxu0 }
 0x4a2   :  { %655 = vrot.lane.b32.xlu0 %v588_v45, %s1137_s20 }
 0x4ac   :  { %v562_v47 = vpop.f32.mrf.mxu3  ;;  %v536_v48 = vpop.f32.mrf.mxu2 }
 0x4ad   :  { %653 = vrot.lane.b32.xlu2 %v562_v47, %s1137_s20 }
 0x4b5   :  { %647 = vrot.lane.b32.xlu2 %v536_v48, %s1135_s16 }
 0x4b7   :  { %v640_v49 = vpop.f32.mrf.mxu2 }
 0x4b8   :  { %663 = vrot.lane.b32.xlu1 %v640_v49, %s1136_s19  ;;  %v646_v53 = vpop.permute.xlu0 %645 }
 0x4b9   :  { %v667_v55 = vsel %vm140_vm8, %v458_v46, %v646_v53  ;;  %v897_v53 = vld [vmem:[%s1478_s4 + $0x70] sm:$0xff] }
 0x507   :  { %v654_v54 = vpop.permute.xlu2 %653 }
 0x508   :  { %v670_v57 = vsel %vm669_vm9, %v667_v55, %v654_v54  ;;  %v896_v54 = vld [vmem:[%s1478_s4 + $0x68] sm:$0xff]  ;;  %v1055_v55 = vld [vmem:[%s1479_s5 + $0x6] ss:$0 sm:$0xff] }
 0x50c   :  { %v662_v61 = vpop.permute.xlu0 %661 }
 0x50d   :  { %v673_v62 = vsel %vm672_vm10, %v670_v57, %v662_v61  ;;  %v895_v57 = vld [vmem:[%s1478_s4 + $0x60] sm:$0xff]  ;;  %v894_v61 = vld [vmem:[%s1478_s4 + $0x58] sm:$0xff] }
 0x50e   :  { %1018 = vmatmul.msk.f32.vlgmr.msrb.gmra.mxu3 %vm33_vm0, %v673_v62 }
 0x50f   :  { %v648_v60 = vpop.permute.xlu2 %647 }
 0x510   :  { %v668_v1 = vsel %vm140_vm8, %v484_v42, %v648_v60 }
 0x514   :  { %v656_v63 = vpop.permute.xlu0 %655 }
 0x515   :  { %v671_v3 = vsel %vm669_vm9, %v668_v1, %v656_v63  ;;  %v893_v63 = vld [vmem:[%s1478_s4 + $0x50] sm:$0xff] }
 0x52a   :  { %v664_v4 = vpop.permute.xlu1 %663 }
 0x52b   :  { %v674_v5 = vsel %vm672_vm10, %v671_v3, %v664_v4  ;;  %v892_v3 = vld [vmem:[%s1478_s4 + $0x48] sm:$0xff]  ;;  %vm933_vm10 = vcmask 1041409  }
 0x52c   :  { %1019 = vmatmul.msk.f32.gmra.mxu3 %vm33_vm0, %v674_v5  ;;  %v891_v5 = vld [vmem:[%s1478_s4 + $0x40] sm:$0xff] }
 0x591   :  { %v703_v7 = vpop.f32.mrf.mxu3 }
 0x592   :  { %v704_v8 = vadd.f32 %v1052_v6, %v703_v7  ;;  %v890_v7 = vld [vmem:[%s1478_s4 + $0x38] sm:$0xff] }
 0x594   :  { %v1350_v9 = vadd.f32 %v704_v8, %v1178_v0 }
 0x596   :  { %v711_v11 = vsel %vm33_vm0, %v1350_v9, 0.0 }
 0x597   :  { %712 = vadd.xlane.f32.xlu2 %v711_v11 }
 0x5af   :  { %v706_v12 = vpop.f32.mrf.mxu3 }
 0x5b0   :  { %v707_v13 = vadd.f32 %v1052_v6, %v706_v12  ;;  %v889_v12 = vld [vmem:[%s1478_s4 + $0x30] sm:$0xff] }
 0x5b2   :  { %v1355_v14 = vadd.f32 %v707_v13, %v1185_v2 }
 0x5b4   :  { %v714_v15 = vsel %vm33_vm0, %v1355_v14, 0.0 }
 0x5b5   :  { %715 = vadd.xlane.f32.xlu0 %v714_v15 }
 0x60a   :  { %v713_v16 = vpop.xlane.xlu2 %712 }
 0x60b   :  { %v717_v17 = vmul.f32 %v713_v16, %v1189_v10  ;;  %v888_v16 = vld [vmem:[%s1478_s4 + $0x28] sm:$0xff] }
 0x60d   :  { %v719_v18 = vsub.f32 %v1350_v9, %v717_v17 }
 0x60f   :  { %v721_v0 = vmul.f32 %v719_v18, %v719_v18 }
 0x611   :  { %v723_v19 = vsel %vm33_vm0, %v721_v0, 0.0  ;;  %v887_v0 = vld [vmem:[%s1478_s4 + $0x20] sm:$0xff] }
 0x612   :  { %724 = vadd.xlane.f32.xlu1 %v723_v19 }
 0x628   :  { %v716_v20 = vpop.xlane.xlu0 %715 }
 0x629   :  { %v718_v21 = vmul.f32 %v716_v20, %v1189_v10  ;;  %v886_v20 = vld [vmem:[%s1478_s4 + $0x18] sm:$0xff] }
 0x62b   :  { %v720_v22 = vsub.f32 %v1355_v14, %v718_v21 }
 0x62d   :  { %v722_v2 = vmul.f32 %v720_v22, %v720_v22 }
 0x62f   :  { %v726_v23 = vsel %vm33_vm0, %v722_v2, 0.0  ;;  %v885_v2 = vld [vmem:[%s1478_s4 + $0x10] sm:$0xff] }
 0x630   :  { %727 = vadd.xlane.f32.xlu2 %v726_v23 }
 0x685   :  { %v725_v58 = vpop.xlane.xlu1 %724 }
 0x686   :  { %v729_v26 = vmul.f32 %v725_v58, %v1189_v10 }
 0x688   :  { %v731_v27 = vadd.f32 1e-05, %v729_v26 }
 0x68a   :  { %1095 = vrsqrt.f32 %v731_v27  ;;  %vm739_vm12 = vweird.f32 %v731_v27 }
 0x690   :  { %v1096_v28 = vpop.eup %1095 }
 0x691   :  { %v734_v30 = vmul.f32 %v1096_v28, %v731_v27  ;;  %vm740_vm11 = vweird.f32 %v1096_v28 }
 0x692   :  { %vm741_vm13 = vmor %vm739_vm12, %vm740_vm11  ;;  %vm935_vm11 = vcmask 1042434   ;;  %vm937_vm12 = vcmask 1043459  }
 0x693   :  { %v735_v29 = vmul.f32 %v1096_v28, %v734_v30 }
 0x695   :  { %v736_v31 = vmul.f32 0.5, %v735_v29 }
 0x697   :  { %v737_v32 = vsub.f32 1.5, %v736_v31 }
 0x699   :  { %v738_v33 = vmul.f32 %v1096_v28, %v737_v32 }
 0x69b   :  { %v742_v35 = vsel %vm741_vm13, %v1096_v28, %v738_v33  ;;  %vm971_vm13 = vcmask 523264  }
 0x69c   :  { %v753_v36 = vmul.f32 %v742_v35, %v719_v18 }
 0x69e   :  { %v756_v38 = vmul.f32 %v1053_v34, %v753_v36 }
 0x6a0   :  { %v759_v39 = vadd.f32 %v1054_v37, %v756_v38 }
 0x6a2   :  { %1020 = vmatmul.msk.f32.vlgmr.msrb.gmra.mxu0 %vm33_vm0, %v759_v39 }
 0x6a3   :  { %v728_v40 = vpop.xlane.xlu2 %727 }
 0x6a4   :  { %v730_v41 = vmul.f32 %v728_v40, %v1189_v10  ;;  %v898_v10 = vld [vmem:[%s1478_s4 + $0x78] sm:$0xff] }
 0x6a5   :  { %900 = vmatpush.msra.mxu1 %v898_v10 }
 0x6a6   :  { %v732_v42 = vadd.f32 1e-05, %v730_v41 }
 0x6a7   :  { %901 = vmatpush.msra.mxu1 %v897_v53 }
 0x6a8   :  { %1097 = vrsqrt.f32 %v732_v42  ;;  %vm749_vm15 = vweird.f32 %v732_v42 }
 0x6a9   :  { %902 = vmatpush.msra.mxu1 %v896_v54 }
 0x6ab   :  { %903 = vmatpush.msra.mxu1 %v895_v57 }
 0x6ad   :  { %904 = vmatpush.msra.mxu1 %v894_v61 }
 0x6ae   :  { %v1098_v43 = vpop.eup %1097 }
 0x6af   :  { %v744_v44 = vmul.f32 %v1098_v43, %v732_v42  ;;  %vm750_vm14 = vweird.f32 %v1098_v43  ;;  %905 = vmatpush.msra.mxu1 %v893_v63 }
 0x6b0   :  { %vm751_vm1 = vmor %vm749_vm15, %vm750_vm14  ;;  %vm973_vm14 = vcmask 785408  }
 0x6b1   :  { %v745_v45 = vmul.f32 %v1098_v43, %v744_v44  ;;  %906 = vmatpush.msra.mxu1 %v892_v3 }
 0x6b3   :  { %v746_v46 = vmul.f32 0.5, %v745_v45  ;;  %907 = vmatpush.msra.mxu1 %v891_v5 }
 0x6b5   :  { %v747_v47 = vsub.f32 1.5, %v746_v46  ;;  %908 = vmatpush.msra.mxu1 %v890_v7 }
 0x6b7   :  { %v748_v48 = vmul.f32 %v1098_v43, %v747_v47  ;;  %909 = vmatpush.msra.mxu1 %v889_v12 }
 0x6b9   :  { %v752_v49 = vsel %vm751_vm1, %v1098_v43, %v748_v48  ;;  %910 = vmatpush.msra.mxu1 %v888_v16 }
 0x6ba   :  { %v754_v50 = vmul.f32 %v752_v49, %v720_v22 }
 0x6bb   :  { %911 = vmatpush.msra.mxu1 %v887_v0 }
 0x6bc   :  { %v757_v51 = vmul.f32 %v1053_v34, %v754_v50 }
 0x6bd   :  { %912 = vmatpush.msra.mxu1 %v886_v20 }
 0x6be   :  { %v760_v52 = vadd.f32 %v1054_v37, %v757_v51 }
 0x6bf   :  { %913 = vmatpush.msra.mxu1 %v885_v2 }
 0x6c0   :  { %1021 = vmatmul.msk.f32.gmra.mxu0 %vm33_vm0, %v760_v52 }
 0x6c1   :  { %914 = vmatpush.msra.mxu1 %v884_v56 }
 0x6c3   :  { %915 = vmatpush.msra.mxu1 %v883_v25 }
 0x71f   :  { %v789_v62 = vpop.f32.mrf.mxu0 }
 0x720   :  { %v1405_v60 = vadd.f32 %v1055_v55, %v789_v62 }
 0x722   :  { %v1411_v1 = vmul.f32 0.70710677, %v1405_v60  ;;  %v795_v3 = vmul.f32 0.5, %v1405_v60 }
 0x724   :  { %v799_v4 = vmul.f32 %v1411_v1, %v1411_v1 }
 0x726   :  { %v800_v6 = vmin.f32 %v799_v4, 16.0 }
 0x728   :  { %v801_v8 = vmul.f32 2.1237322e-06, %v800_v6  ;;  %v812_v11 = vmul.f32 3.8918573e-05, %v800_v6 }
 0x72a   :  { %v802_v13 = vadd.f32 0.00028619796, %v801_v8  ;;  %v813_v15 = vadd.f32 0.001143296, %v812_v11 }
 0x72c   :  { %v803_v17 = vmul.f32 %v802_v13, %v800_v6  ;;  %v814_v18 = vmul.f32 %v813_v15, %v800_v6 }
 0x72e   :  { %v815_v19 = vadd.f32 0.014752088, %v814_v18  ;;  %v804_v21 = vadd.f32 0.0036580483, %v803_v17 }
 0x730   :  { %v816_v22 = vmul.f32 %v815_v19, %v800_v6  ;;  %v805_v59 = vmul.f32 %v804_v21, %v800_v6 }
 0x732   :  { %v817_v23 = vadd.f32 0.112945676, %v816_v22  ;;  %v806_v26 = vadd.f32 0.05243302, %v805_v59 }
 0x734   :  { %v818_v24 = vmul.f32 %v817_v23, %v800_v6  ;;  %v807_v30 = vmul.f32 %v806_v26, %v800_v6 }
 0x736   :  { %v819_v58 = vadd.f32 0.4994258, %v818_v24  ;;  %v808_v32 = vadd.f32 0.18741608, %v807_v30 }
 0x738   :  { %v820_v27 = vmul.f32 %v819_v58, %v800_v6  ;;  %v809_v36 = vmul.f32 %v808_v32, %v800_v6 }
 0x73a   :  { %v821_v28 = vadd.f32 1.0, %v820_v27  ;;  %v810_v43 = vadd.f32 1.1283791, %v809_v36 }
 0x73c   :  { %1099 = vrcp.f32 %v821_v28  ;;  %v833_v40 = vand.u32 2147483648, %v821_v28  ;;  %v831_v45 = vand.u32 2147483647, %v821_v28  ;;  %vm827_vm3 = vweird.f32 %v821_v28 }
 0x73d   :  { %v792_v29 = vpop.f32.mrf.mxu0  ;;  %v811_v52 = vmul.f32 %v810_v43, %v1411_v1 }
 0x73e   :  { %v1445_v31 = vadd.f32 %v1055_v55, %v792_v29  ;;  %v834_v49 = vor.u32 1.1754944e-38, %v833_v40  ;;  %vm832_vm5 = vcmp.eq.f32.partialorder %v831_v45, 8.507059e+37 }
 0x740   :  { %v798_v33 = vmul.f32 0.70710677, %v1445_v31  ;;  %v796_v58 = vmul.f32 0.5, %v1445_v31 }
 0x742   :  { %v1100_v34 = vpop.eup %1099  ;;  %v839_v35 = vmul.f32 %v798_v33, %v798_v33 }
 0x743   :  { %v823_v37 = vmul.f32 %v1100_v34, %v821_v28  ;;  %vm828_vm2 = vweird.f32 %v1100_v34  ;;  %v1056_v28 = vld [vmem:[%s1479_s5 + $0x5] ss:$0 sm:$0xff]  ;;  %s1138_s5 = smov 32  }
 0x744   :  { %v840_v38 = vmin.f32 %v839_v35, 16.0  ;;  %vm829_vm4 = vmor %vm827_vm3, %vm828_vm2 }
 0x745   :  { %v824_v39 = vsub.f32 1.0, %v823_v37 }
 0x746   :  { %v841_v41 = vmul.f32 2.1237322e-06, %v840_v38  ;;  %v852_v42 = vmul.f32 3.8918573e-05, %v840_v38 }
 0x747   :  { %v825_v44 = vmul.f32 %v1100_v34, %v824_v39 }
 0x748   :  { %v842_v46 = vadd.f32 0.00028619796, %v841_v41  ;;  %v853_v47 = vadd.f32 0.001143296, %v852_v42 }
 0x749   :  { %v826_v48 = vadd.f32 %v1100_v34, %v825_v44 }
 0x74a   :  { %v843_v50 = vmul.f32 %v842_v46, %v840_v38  ;;  %v854_v51 = vmul.f32 %v853_v47, %v840_v38 }
 0x74b   :  { %v830_v10 = vsel %vm829_vm4, %v1100_v34, %v826_v48 }
 0x74c   :  { %v835_v53 = vsel %vm832_vm5, %v834_v49, %v830_v10  ;;  %v855_v54 = vadd.f32 0.014752088, %v854_v51  ;;  %v844_v57 = vadd.f32 0.0036580483, %v843_v50 }
 0x74d   :  { %v836_v55 = vmul.f32 %v835_v53, %v811_v52 }
 0x74e   :  { %v856_v61 = vmul.f32 %v855_v54, %v840_v38  ;;  %v845_v5 = vmul.f32 %v844_v57, %v840_v38 }
 0x74f   :  { %v1022_v62 = vclamps-f32 %v836_v55, 1.0 }
 0x750   :  { %v857_v63 = vadd.f32 0.112945676, %v856_v61  ;;  %v846_v11 = vadd.f32 0.05243302, %v845_v5 }
 0x751   :  { %v879_v4 = vadd.f32 1.0, %v1022_v62 }
 0x752   :  { %v858_v6 = vmul.f32 %v857_v63, %v840_v38  ;;  %v847_v13 = vmul.f32 %v846_v11, %v840_v38 }
 0x753   :  { %v881_v7 = vmul.f32 %v879_v4, %v795_v3 }
 0x754   :  { %v859_v8 = vadd.f32 0.4994258, %v858_v6  ;;  %v848_v15 = vadd.f32 0.18741608, %v847_v13 }
 0x755   :  { %916 = vmatmul.f32.vlgmr.msra.gmra.mxu1 %v881_v7 }
 0x756   :  { %v860_v12 = vmul.f32 %v859_v8, %v840_v38  ;;  %v849_v17 = vmul.f32 %v848_v15, %v840_v38 }
 0x758   :  { %v861_v1 = vadd.f32 1.0, %v860_v12  ;;  %v850_v20 = vadd.f32 1.1283791, %v849_v17 }
 0x75a   :  { %1101 = vrcp.f32 %v861_v1  ;;  %v873_v19 = vand.u32 2147483648, %v861_v1  ;;  %v871_v60 = vand.u32 2147483647, %v861_v1  ;;  %vm867_vm7 = vweird.f32 %v861_v1 }
 0x75b   :  { %v851_v23 = vmul.f32 %v850_v20, %v798_v33 }
 0x75c   :  { %v874_v2 = vor.u32 1.1754944e-38, %v873_v19  ;;  %vm872_vm9 = vcmp.eq.f32.partialorder %v871_v60, 8.507059e+37 }
 0x760   :  { %v1102_v16 = vpop.eup %1101 }
 0x761   :  { %v863_v18 = vmul.f32 %v1102_v16, %v861_v1  ;;  %vm868_vm6 = vweird.f32 %v1102_v16 }
 0x762   :  { %vm869_vm8 = vmor %vm867_vm7, %vm868_vm6 }
 0x763   :  { %v864_v0 = vsub.f32 1.0, %v863_v18 }
 0x765   :  { %v865_v21 = vmul.f32 %v1102_v16, %v864_v0 }
 0x767   :  { %v866_v22 = vadd.f32 %v1102_v16, %v865_v21 }
 0x769   :  { %v870_v56 = vsel %vm869_vm8, %v1102_v16, %v866_v22 }
 0x76a   :  { %v875_v59 = vsel %vm872_vm9, %v874_v2, %v870_v56 }
 0x76b   :  { %v876_v24 = vmul.f32 %v875_v59, %v851_v23 }
 0x76d   :  { %v1023_v25 = vclamps-f32 %v876_v24, 1.0 }
 0x76f   :  { %v880_v26 = vadd.f32 1.0, %v1023_v25 }
 0x771   :  { %v882_v27 = vmul.f32 %v880_v26, %v796_v58 }
 0x773   :  { %919 = vmatmul.f32.gmra.mxu1 %v882_v27 }
 0x7d2   :  { %v917_v30 = vpop.f32.mrf.mxu1 }
 0x7d3   :  { %v918_v29 = vadd.f32 %v1056_v28, %v917_v30 }
 0x7d5   :  { %v923_v32 = vadd.f32 %v918_v29, %v1350_v9 }
 0x7d7   :  { %v927_v34 = vrot.slane %v923_v32, 4  ;;  %v929_v33 = vperm.slane %v923_v32, 0  ;;  %v960_v42 = vperm.slane %v923_v32, 3  ;;  %v950_v43 = vperm.slane %v923_v32, 2 }
 0x7d8   :  { %v940_v44 = vperm.slane %v923_v32, 1 }
 0x7d9   :  { %v930_v35 = vperm.slane %v927_v34, 0  ;;  %v961_v31 = vperm.slane %v927_v34, 3  ;;  %v951_v39 = vperm.slane %v927_v34, 2  ;;  %v941_v40 = vperm.slane %v927_v34, 1 }
 0x7db   :  { %v934_v36 = vsel %vm933_vm10, %v930_v35, %v929_v33  ;;  %v964_v48 = vsel %vm933_vm10, %v961_v31, %v960_v42  ;;  %v954_v49 = vsel %vm933_vm10, %v951_v39, %v950_v43  ;;  %v944_v50 = vsel %vm933_vm10, %v941_v40, %v940_v44 }
 0x7f0   :  { %v920_v37 = vpop.f32.mrf.mxu1 }
 0x7f1   :  { %v921_v38 = vadd.f32 %v1056_v28, %v920_v37 }
 0x7f3   :  { %v924_v41 = vadd.f32 %v921_v38, %v1355_v14 }
 0x7f5   :  { %v928_v45 = vrot.slane %v924_v41, 4  ;;  %v962_v9 = vperm.slane %v924_v41, 3  ;;  %v952_v46 = vperm.slane %v924_v41, 2  ;;  %v942_v47 = vperm.slane %v924_v41, 1 }
 0x7f6   :  { %v931_v51 = vperm.slane %v924_v41, 0 }
 0x7f7   :  { %v963_v52 = vperm.slane %v928_v45, 3  ;;  %v965_v10 = vsel %vm935_vm11, %v962_v9, %v964_v48  ;;  %v953_v14 = vperm.slane %v928_v45, 2  ;;  %v955_v53 = vsel %vm935_vm11, %v952_v46, %v954_v49 }
 0x7f8   :  { %v943_v54 = vperm.slane %v928_v45, 1  ;;  %v945_v55 = vsel %vm935_vm11, %v942_v47, %v944_v50  ;;  %v932_v57 = vperm.slane %v928_v45, 0  ;;  %v936_v61 = vsel %vm935_vm11, %v931_v51, %v934_v36 }
 0x7f9   :  { %v966_v62 = vsel %vm937_vm12, %v963_v52, %v965_v10  ;;  %v956_v63 = vsel %vm937_vm12, %v953_v14, %v955_v53 }
 0x7fa   :  { %967 = vrot.lane.b32.xlu2 %v966_v62, %s1132_s13  ;;  %957 = vrot.lane.b32.xlu1 %v956_v63, %s1134_s15  ;;  %v946_v3 = vsel %vm937_vm12, %v943_v54, %v945_v55  ;;  %v938_v4 = vsel %vm937_vm12, %v932_v57, %v936_v61 }
 0x7fb   :  { %947 = vrot.lane.b32.xlu0 %v946_v3, %s1138_s5 }
 0x854   :  { %v968_v8 = vpop.permute.xlu2 %967 }
 0x86c   :  { %v958_v5 = vpop.permute.xlu1 %957 }
 0x86d   :  { %v948_v6 = vpop.permute.xlu0 %947 }
 0x86e   :  { %v970_v7 = vsel %vm33_vm0, %v938_v4, %v948_v6 }
 0x86f   :  { %v972_v11 = vsel %vm971_vm13, %v970_v7, %v958_v5 }
 0x870   :  { %v974_v12 = vsel %vm973_vm14, %v972_v11, %v968_v8 }
 0x871   :  { %975 = vst [vmem:[#allocation2] sm:$0xf] %v974_v12 }
 0x872   :  { %986 = dma.vmem_to_hbm [thread:$0]  %s982_s0, 64, %s984_s26, [#allocation3]  }
 0x873   :  { %1127 = dma.done.wait [#allocation3], 64  }
 0x874   :  { %1128 = vsyncadd [#allocation3], 4294967232 }
 0x875   :  { %991 = vsyncpa [#allocation3], 1 }

</bundles_post_ra>
